<compile_context>
chip_gen: v5e
topology: v5e:2x2
jax: 0.10.0
libtpu: 0.0.40
codegen_flags: <defaults>
</compile_context>

<pallas_src>
import functools

import jax
import jax.numpy as jnp
from jax.experimental import pallas as pl
from jax.experimental.pallas import tpu as pltpu


_ACT_DTYPE = jnp.bfloat16


# --------------------------- generation detection -----------------------------

def _tpu_generation():
    try:
        kind = jax.devices()[0].device_kind.lower()
    except Exception:
        return 6
    for g in (7, 6, 5, 4, 3, 2):
        if f"v{g}" in kind:
            return g
    return 6


_GEN = _tpu_generation()
_WIDE_MXU = _GEN >= 6       # 256-wide MXU lanes on v6e / v7x; 128 on v5e
_BF16_TAPS = _GEN >= 6      # bf16 VALU available on v6e / v7x


# ----------------------------- small helpers ----------------------------------

def _round_up(x, m):
    return ((x + m - 1) // m) * m


def _pad_kn(K, N):
    """Padded (Kp, Np) for a weight matrix, matched to the MXU width."""
    if _WIDE_MXU and N >= 192:
        return _round_up(K, 256), _round_up(N, 256)
    return _round_up(K, 128), _round_up(N, 128)


def _pick_tm(Mp):
    """Largest M tile; keep >=2 parallel grid steps on v7x for megacore."""
    cap = Mp // 2 if (_GEN >= 7 and Mp >= 512) else Mp
    for c in (512, 256, 128, 64, 32, 16):
        if c <= cap and Mp % c == 0:
            return c
    return Mp


def _pick_tile(dim, candidates):
    for c in candidates:
        if dim % c == 0:
            return c
    return dim


def _sigmoid(x):
    # exp on the EUP; approx reciprocal also on the EUP (frees VALU slots).
    return pl.reciprocal(1.0 + jnp.exp(-x), approx=True)


def _apply_act(r, act):
    if act == "silu":
        return r * _sigmoid(r)
    if act == "sigmoid":
        return _sigmoid(r)
    return r


# ----------------------------- Pallas kernels ---------------------------------

def _mm_kernel(a_ref, b_ref, bias_ref, o_ref, *, act):
    """o = act(A @ B + bias); BN scale pre-folded into B columns; f32 MXU acc."""
    r = jnp.dot(a_ref[...], b_ref[...], preferred_element_type=jnp.float32)
    r = r + bias_ref[...]
    r = _apply_act(r, act)
    o_ref[...] = r.astype(o_ref.dtype)


def _mm_res_kernel(a_ref, b_ref, bias_ref, res_ref, o_ref, *, act):
    """Same as _mm_kernel but with the block residual fused into the epilogue."""
    r = jnp.dot(a_ref[...], b_ref[...], preferred_element_type=jnp.float32)
    r = r + bias_ref[...]
    r = _apply_act(r, act)
    r = r + res_ref[...].astype(jnp.float32)
    o_ref[...] = r.astype(o_ref.dtype)


def _dw_kernel(x_ref, w_ref, b_ref, o_ref, *, bf16_taps):
    """Depthwise 3x3 conv: 9-tap MAC (BN scale folded into w) + bias + SiLU.

    x block: (kk, tm, tc) tap slabs; w block: (kk, 1, tc) per-(tap, channel)."""
    kk = x_ref.shape[0]
    if bf16_taps:                              # bf16 VALU (v6e / v7x)
        r = x_ref[0] * w_ref[0]
        for t in range(1, kk):
            r = r + x_ref[t] * w_ref[t]
        r = r.astype(jnp.float32) + b_ref[...]
    else:                                      # f32 path (no bf16 VPU on v5e)
        r = x_ref[0].astype(jnp.float32) * w_ref[0].astype(jnp.float32)
        for t in range(1, kk):
            r = r + x_ref[t].astype(jnp.float32) * w_ref[t].astype(jnp.float32)
        r = r + b_ref[...]
    r = r * _sigmoid(r)                        # SiLU
    o_ref[...] = r.astype(o_ref.dtype)


# ------------------------ cached pallas_call builders --------------------------

@functools.lru_cache(maxsize=None)
def _build_matmul(Mp, Kp, Np, tm, act, with_res, out_dtype):
    in_specs = [
        pl.BlockSpec((tm, Kp), lambda i: (i, 0)),        # A rows (full K)
        pl.BlockSpec((Kp, Np), lambda i: (0, 0)),        # weight: VMEM-resident
        pl.BlockSpec((1, Np), lambda i: (0, 0)),         # folded bias
    ]
    if with_res:
        in_specs.append(pl.BlockSpec((tm, Np), lambda i: (i, 0)))
        kernel = functools.partial(_mm_res_kernel, act=act)
    else:
        kernel = functools.partial(_mm_kernel, act=act)
    return pl.pallas_call(
        kernel,
        out_shape=jax.ShapeDtypeStruct((Mp, Np), out_dtype),
        grid=(Mp // tm,),
        in_specs=in_specs,
        out_specs=pl.BlockSpec((tm, Np), lambda i: (i, 0)),
        compiler_params=pltpu.CompilerParams(dimension_semantics=("parallel",)),
    )


@functools.lru_cache(maxsize=None)
def _build_dw(kk, Mp, Cp, tm, tc, bf16_taps):
    return pl.pallas_call(
        functools.partial(_dw_kernel, bf16_taps=bf16_taps),
        out_shape=jax.ShapeDtypeStruct((Mp, Cp), jnp.bfloat16),
        grid=(Mp // tm, Cp // tc),
        in_specs=[
            pl.BlockSpec((kk, tm, tc), lambda i, j: (0, i, j)),
            pl.BlockSpec((kk, 1, tc), lambda i, j: (0, 0, j)),
            pl.BlockSpec((1, tc), lambda i, j: (0, j)),
        ],
        out_specs=pl.BlockSpec((tm, tc), lambda i, j: (i, j)),
        compiler_params=pltpu.CompilerParams(
            dimension_semantics=("parallel", "parallel")),
    )


# ------------------------------ op wrappers ------------------------------------

def matmul_epilogue(a, w_p, bias, act="none", residual=None, out_dtype=_ACT_DTYPE):
    """act(a @ w_p + bias) [+ residual]; w_p is pre-folded/pre-padded bf16."""
    M, K = a.shape
    Kp, Np = w_p.shape
    N = bias.shape[0]
    Mp = _round_up(max(M, 16), 16)             # bf16: keep sublanes full (x16)
    a_p = a.astype(jnp.bfloat16)
    if (Mp - M) or (Kp - K):
        a_p = jnp.pad(a_p, ((0, Mp - M), (0, Kp - K)))
    b_p = jnp.pad(bias.astype(jnp.float32), (0, Np - N)).reshape(1, Np)
    tm = _pick_tm(Mp)
    args = [a_p, w_p, b_p]
    with_res = residual is not None
    if with_res:
        r_p = residual.astype(jnp.bfloat16)
        if (Mp - M) or (Np - N):
            r_p = jnp.pad(r_p, ((0, Mp - M), (0, Np - N)))
        args.append(r_p)
    out = _build_matmul(Mp, Kp, Np, tm, act, with_res,
                        jnp.dtype(out_dtype).name)(*args)
    return out[:M, :N]


def conv_bn_act(x, p, *, ksize=1, stride=1, padding=0, act="silu", residual=None):
    """NHWC conv + folded BN + activation (+ fused residual) via Pallas matmul."""
    N, H, W, Cin = x.shape
    cout = p["b"].shape[0]
    OH = (H + 2 * padding - ksize) // stride + 1
    OW = (W + 2 * padding - ksize) // stride + 1
    if ksize == 1 and stride == 1 and padding == 0:
        a = x.reshape(N * H * W, Cin)                          # 1x1 fast path
    else:
        xp = jnp.pad(x, ((0, 0), (padding, padding), (padding, padding), (0, 0)))
        cols = [xp[:, di:di + stride * OH:stride, dj:dj + stride * OW:stride, :]
                for di in range(ksize) for dj in range(ksize)]
        a = jnp.concatenate(cols, axis=-1).reshape(N * OH * OW, ksize * ksize * Cin)
    res2d = residual.reshape(N * OH * OW, cout) if residual is not None else None
    out = matmul_epilogue(a, p["w"], p["b"], act=act, residual=res2d)
    return out.reshape(N, OH, OW, cout)


def depthwise_conv_bn_silu(x, p, *, stride=1, padding=1):
    """Depthwise 3x3 conv + folded BN + SiLU (Pallas VPU kernel)."""
    N, H, W, C = x.shape
    k = 3
    kk = p["w"].shape[0]
    Cp = p["w"].shape[-1]
    OH = (H + 2 * padding - k) // stride + 1
    OW = (W + 2 * padding - k) // stride + 1
    xp = jnp.pad(x, ((0, 0), (padding, padding), (padding, padding), (0, 0)))
    cols = [xp[:, di:di + stride * OH:stride, dj:dj + stride * OW:stride, :]
            for di in range(k) for dj in range(k)]
    M = N * OH * OW
    patches = jnp.stack(cols, axis=0).reshape(kk, M, C)
    Mp = _round_up(max(M, 16), 16)
    patches = jnp.pad(patches.astype(_ACT_DTYPE),
                      ((0, 0), (0, Mp - M), (0, Cp - C)))
    b_p = jnp.pad(p["b"].astype(jnp.float32), (0, Cp - C)).reshape(1, Cp)
    tm = _pick_tm(Mp)
    tc = _pick_tile(Cp, (512, 256, 128))
    out = _build_dw(kk, Mp, Cp, tm, tc, _BF16_TAPS)(patches, p["w"], b_p)
    return out[:M, :C].reshape(N, OH, OW, C)


def se_block(x, p):
    """Squeeze-Excitation as plain XLA: batch=2 rows makes Pallas pure overhead."""
    pooled = jnp.mean(x.astype(jnp.float32), axis=(1, 2))            # (N, C)
    h = jax.nn.silu(pooled @ p["fc1_w"] + p["fc1_b"])
    s = jax.nn.sigmoid(h @ p["fc2_w"] + p["fc2_b"])
    return (x.astype(jnp.float32) * s[:, None, None, :]).astype(x.dtype)


# ------------------------------ block forwards ----------------------------------

@jax.jit
def stem_forward(x_nchw, p):
    x = jnp.transpose(x_nchw, (0, 2, 3, 1)).astype(_ACT_DTYPE)       # NCHW -> NHWC
    return conv_bn_act(x, p, ksize=3, stride=2, padding=1, act="silu")


@functools.partial(jax.jit, static_argnames=("stride",))
def fused_mbconv_block(x, p, stride):
    cin = x.shape[-1]
    if "exp" in p:                                       # expand 3x3 + project 1x1
        cout = p["proj"]["b"].shape[0]
        use_res = (stride == 1 and cin == cout)
        h = conv_bn_act(x, p["exp"], ksize=3, stride=stride, padding=1, act="silu")
        return conv_bn_act(h, p["proj"], ksize=1, act="none",
                           residual=x if use_res else None)
    cout = p["conv"]["b"].shape[0]                       # expand_ratio == 1
    use_res = (stride == 1 and cin == cout)
    return conv_bn_act(x, p["conv"], ksize=3, stride=stride, padding=1, act="silu",
                       residual=x if use_res else None)


@functools.partial(jax.jit, static_argnames=("stride",))
def mbconv_block(x, p, stride):
    cin = x.shape[-1]
    cout = p["proj"]["b"].shape[0]
    use_res = (stride == 1 and cin == cout)
    h = conv_bn_act(x, p["exp"], ksize=1, act="silu")                 # 1x1 expand
    h = depthwise_conv_bn_silu(h, p["dw"], stride=stride, padding=1)  # dw 3x3
    h = se_block(h, p["se"])                                          # SE (XLA)
    return conv_bn_act(h, p["proj"], ksize=1, act="none",
                       residual=x if use_res else None)               # 1x1 project


@jax.jit
def head_classify(x, p):
    x = conv_bn_act(x, p["conv"], ksize=1, act="silu")                # 1x1 -> 1280
    feat = jnp.mean(x.astype(jnp.float32), axis=(1, 2))               # global pool
    # nn.Dropout(p=0.2): identity in eval/inference mode.
    return feat @ p["fc_w"] + p["fc_b"]                               # XLA classifier


def beetle_efficientnet_v2_s_forward(x_nchw, params):
    x = stem_forward(x_nchw.astype(jnp.float32), params["stem"])
    for stage in params["stages"]:
        fwd = fused_mbconv_block if stage["type"] == "fused" else mbconv_block
        for blk, st in zip(stage["blocks"], stage["strides"]):
            x = fwd(x, blk, stride=st)
    return head_classify(x, params["head"])                           # (N, classes)


# --------------------------- parameter synthesis --------------------------------

# (block type, expand_ratio, stride, in_channels, out_channels, num_layers)
_STAGE_CFG = [
    ("fused", 1, 1, 24, 24, 2),
    ("fused", 4, 2, 24, 48, 4),
    ("fused", 4, 2, 48, 64, 4),
    ("mb",    4, 2, 64, 128, 6),
    ("mb",    6, 1, 128, 160, 9),
    ("mb",    6, 2, 160, 256, 15),
]


def _conv_w(key, kh, kw, cin, cout):
    std = (2.0 / (kh * kw * cin)) ** 0.5
    return jax.random.normal(key, (kh, kw, cin, cout), jnp.float32) * std


def _dw_w(key, k, c):
    std = (2.0 / (k * k)) ** 0.5
    return jax.random.normal(key, (k, k, c), jnp.float32) * std


def _linear_w(key, fan_in, fan_out):
    std = (2.0 / fan_in) ** 0.5
    return jax.random.normal(key, (fan_in, fan_out), jnp.float32) * std


def _bn_fold(key, c, eps=1e-3):
    k1, k2, k3, k4 = jax.random.split(key, 4)
    gamma = 1.0 + 0.1 * jax.random.normal(k1, (c,), jnp.float32)
    beta = 0.1 * jax.random.normal(k2, (c,), jnp.float32)
    mean = 0.1 * jax.random.normal(k3, (c,), jnp.float32)
    var = 1.0 + 0.5 * jax.random.uniform(k4, (c,), jnp.float32)
    s = gamma / jnp.sqrt(var + eps)
    return s, beta - mean * s


def init_efficientnet_v2_s_params(key, num_classes=8):
    keys = iter(jax.random.split(key, 1024))
    params = {}
    s, b = _bn_fold(next(keys), 24)
    params["stem"] = {"w": _conv_w(next(keys), 3, 3, 3, 24), "s": s, "b": b}

    stages = []
    for btype, expand, stride, cin, cout, nlayers in _STAGE_CFG:
        blocks, strides = [], []
        block_in = cin
        for li in range(nlayers):
            st = stride if li == 0 else 1
            strides.append(st)
            exp_c = block_in * expand
            blk = {}
            if btype == "fused":
                if expand == 1:
                    blk["conv_w"] = _conv_w(next(keys), 3, 3, block_in, cout)
                    blk["conv_s"], blk["conv_b"] = _bn_fold(next(keys), cout)
                else:
                    blk["exp_w"] = _conv_w(next(keys), 3, 3, block_in, exp_c)
                    blk["exp_s"], blk["exp_b"] = _bn_fold(next(keys), exp_c)
                    blk["proj_w"] = _conv_w(next(keys), 1, 1, exp_c, cout)
                    blk["proj_s"], blk["proj_b"] = _bn_fold(next(keys), cout)
            else:
                sq = max(1, block_in // 4)
                blk["exp_w"] = _conv_w(next(keys), 1, 1, block_in, exp_c)
                blk["exp_s"], blk["exp_b"] = _bn_fold(next(keys), exp_c)
                blk["dw_w"] = _dw_w(next(keys), 3, exp_c)
                blk["dw_s"], blk["dw_b"] = _bn_fold(next(keys), exp_c)
                blk["fc1_w"] = _linear_w(next(keys), exp_c, sq)
                blk["fc1_b"] = 0.01 * jax.random.normal(next(keys), (sq,), jnp.float32)
                blk["fc2_w"] = _linear_w(next(keys), sq, exp_c)
                blk["fc2_b"] = 0.01 * jax.random.normal(next(keys), (exp_c,), jnp.float32)
                blk["proj_w"] = _conv_w(next(keys), 1, 1, exp_c, cout)
                blk["proj_s"], blk["proj_b"] = _bn_fold(next(keys), cout)
            blocks.append(blk)
            block_in = cout
        stages.append({"type": btype, "blocks": blocks, "strides": strides})
    params["stages"] = stages

    hs, hb = _bn_fold(next(keys), 1280)
    bound = 1.0 / (1280.0 ** 0.5)
    kw_, kb_ = jax.random.split(next(keys))
    params["head"] = {
        "head_w": _conv_w(next(keys), 1, 1, 256, 1280),
        "head_s": hs, "head_b": hb,
        "fc_w": jax.random.uniform(kw_, (1280, num_classes), jnp.float32,
                                   minval=-bound, maxval=bound),
        "fc_b": jax.random.uniform(kb_, (num_classes,), jnp.float32,
                                   minval=-bound, maxval=bound),
    }
    return params


# ------------------------ one-time weight preparation ----------------------------

def _prep_conv(w4, s, b):
    """Fold BN scale into the weight columns, reshape to 2-D, pad+cast to bf16."""
    kh, kw, cin, cout = w4.shape
    w2 = (w4 * s).reshape(kh * kw * cin, cout)
    K, N = w2.shape
    Kp, Np = _pad_kn(K, N)
    return {"w": jnp.pad(w2, ((0, Kp - K), (0, Np - N))).astype(jnp.bfloat16),
            "b": b.astype(jnp.float32)}


def _prep_dw(w3, s, b):
    kh, kw, c = w3.shape
    Cp = _round_up(c, 128)
    w2 = (w3 * s).reshape(kh * kw, 1, c)
    return {"w": jnp.pad(w2, ((0, 0), (0, 0), (0, Cp - c))).astype(jnp.bfloat16),
            "b": b.astype(jnp.float32)}


def prepare_params(raw):
    """Pre-fold BN + pre-pad/pre-cast every weight ONCE (outside the forward)."""
    prepped = {"stem": _prep_conv(raw["stem"]["w"], raw["stem"]["s"],
                                  raw["stem"]["b"]),
               "stages": []}
    for stage in raw["stages"]:
        blocks = []
        for blk in stage["blocks"]:
            if stage["type"] == "fused":
                if "conv_w" in blk:
                    blocks.append({"conv": _prep_conv(blk["conv_w"], blk["conv_s"],
                                                      blk["conv_b"])})
                else:
                    blocks.append({
                        "exp": _prep_conv(blk["exp_w"], blk["exp_s"], blk["exp_b"]),
                        "proj": _prep_conv(blk["proj_w"], blk["proj_s"], blk["proj_b"]),
                    })
            else:
                blocks.append({
                    "exp": _prep_conv(blk["exp_w"], blk["exp_s"], blk["exp_b"]),
                    "dw": _prep_dw(blk["dw_w"], blk["dw_s"], blk["dw_b"]),
                    "se": {"fc1_w": blk["fc1_w"], "fc1_b": blk["fc1_b"],
                           "fc2_w": blk["fc2_w"], "fc2_b": blk["fc2_b"]},
                    "proj": _prep_conv(blk["proj_w"], blk["proj_s"], blk["proj_b"]),
                })
        prepped["stages"].append({"type": stage["type"],
                                  "strides": stage["strides"], "blocks": blocks})
    head = raw["head"]
    prepped["head"] = {"conv": _prep_conv(head["head_w"], head["head_s"],
                                          head["head_b"]),
                       "fc_w": head["fc_w"], "fc_b": head["fc_b"]}
    return prepped


# ------------------------------------ main ----------------------------------------

if __name__ == "__main__":
    key = jax.random.PRNGKey(0)
    kx, kp = jax.random.split(key)
    x = jax.random.normal(kx, (2, 3, 64, 64), jnp.float32)            # NCHW, like PyTorch
    raw_params = init_efficientnet_v2_s_params(kp, num_classes=8)
    params = prepare_params(raw_params)                               # one-time weight prep

    logits = beetle_efficientnet_v2_s_forward(x, params)
    logits = jax.block_until_ready(logits)

    assert logits.shape == (2, 8), logits.shape
    assert bool(jnp.isfinite(logits).all())
    print("KERNEL_OK")
</pallas_src>

<mosaic_0001>
module attributes {stable_mosaic.version = 11 : i64} {
  func.func @_mm_kernel(%arg0: i32, %arg1: memref<512x128xbf16, #tpu.memory_space<vmem>>, %arg2: memref<128x128xbf16, #tpu.memory_space<vmem>>, %arg3: memref<1x128xf32, #tpu.memory_space<vmem>>, %arg4: memref<512x128xbf16, #tpu.memory_space<vmem>>) attributes {dimension_semantics = [#tpu.dimension_semantics<parallel>], iteration_bounds = array<i64: 4>, scalar_prefetch = 0 : i64, scratch_operands = 0 : i64, tpu.core_type = #tpu.core_type<tc>, window_params = [{transform_indices = @transform_0, window_bounds = array<i64: 512, 128>}, {pipeline_mode = #tpu.pipeline_mode<synchronous>, transform_indices = @transform_1, window_bounds = array<i64: 128, 128>}, {pipeline_mode = #tpu.pipeline_mode<synchronous>, transform_indices = @transform_2, window_bounds = array<i64: 1, 128>}, {transform_indices = @transform_3, window_bounds = array<i64: 512, 128>}]} {
    %c0 = arith.constant 0 : index
    %c0_0 = arith.constant 0 : index
    %0 = vector.load %arg1[%c0, %c0_0] : memref<512x128xbf16, #tpu.memory_space<vmem>>, vector<512x128xbf16>
    %c0_1 = arith.constant 0 : index
    %c0_2 = arith.constant 0 : index
    %1 = vector.load %arg2[%c0_1, %c0_2] : memref<128x128xbf16, #tpu.memory_space<vmem>>, vector<128x128xbf16>
    %cst = arith.constant dense<0.000000e+00> : vector<512x128xf32>
    %2 = tpu.matmul %0, %1, %cst {dimension_numbers = #tpu.dot_dimension_numbers<[1], [0], [0], [1], [0, 0, 1, 1], [], []>} : vector<512x128xbf16>, vector<128x128xbf16>, vector<512x128xf32> -> vector<512x128xf32>
    %c0_3 = arith.constant 0 : index
    %c0_4 = arith.constant 0 : index
    %3 = vector.load %arg3[%c0_3, %c0_4] : memref<1x128xf32, #tpu.memory_space<vmem>>, vector<1x128xf32>
    %4 = vector.broadcast %3 : vector<1x128xf32> to vector<512x128xf32>
    %5 = arith.addf %2, %4 : vector<512x128xf32>
    %cst_5 = arith.constant 0.000000e+00 : f32
    %6 = vector.broadcast %cst_5 : f32 to vector<512x128xf32>
    %7 = arith.subf %6, %5 : vector<512x128xf32>
    %8 = math.exp %7 : vector<512x128xf32>
    %cst_6 = arith.constant 1.000000e+00 : f32
    %9 = vector.broadcast %cst_6 : f32 to vector<512x128xf32>
    %10 = arith.addf %9, %8 : vector<512x128xf32>
    %11 = tpu.reciprocal %10 {approx = true} : vector<512x128xf32> -> vector<512x128xf32>
    %12 = arith.mulf %5, %11 : vector<512x128xf32>
    %13 = arith.truncf %12 : vector<512x128xf32> to vector<512x128xbf16>
    %c0_7 = arith.constant 0 : index
    %c0_8 = arith.constant 0 : index
    %14 = vector.load %arg4[%c0_7, %c0_8] : memref<512x128xbf16, #tpu.memory_space<vmem>>, vector<512x128xbf16>
    tpu.vector_store %arg4[%c0_7, %c0_8], %13 {strides = array<i32>} : memref<512x128xbf16, #tpu.memory_space<vmem>>, vector<512x128xbf16>,
    return
  }
  func.func @transform_0(%arg0: i32) -> (i32, i32) {
    %c0_i32 = arith.constant 0 : i32
    %c0_i32_0 = arith.constant 0 : i32
    return %arg0, %c0_i32 : i32, i32
  }
  func.func @transform_1(%arg0: i32) -> (i32, i32) {
    %c0_i32 = arith.constant 0 : i32
    %c0_i32_0 = arith.constant 0 : i32
    %c0_i32_1 = arith.constant 0 : i32
    return %c0_i32, %c0_i32_0 : i32, i32
  }
  func.func @transform_2(%arg0: i32) -> (i32, i32) {
    %c0_i32 = arith.constant 0 : i32
    %c0_i32_0 = arith.constant 0 : i32
    %c0_i32_1 = arith.constant 0 : i32
    return %c0_i32, %c0_i32_0 : i32, i32
  }
  func.func @transform_3(%arg0: i32) -> (i32, i32) {
    %c0_i32 = arith.constant 0 : i32
    %c0_i32_0 = arith.constant 0 : i32
    return %arg0, %c0_i32 : i32, i32
  }
}

</mosaic_0001>

<bundles_post_ra>
// kernel: stem_forward.1
= control target key start
LH: loop header
LB: loop body
LE: loop exit
PB: predicated region body
PF: predicated region fallthrough
CT: control target
= control target key end

     0   :  { %s1955_s12 = smov 0   ;;  %s2404_s0 = inlined_call_operand.vmem [shape: bf16[2048,128], index: 0, kind: input, shape index: {}]   ;;  %s2405_s1 = inlined_call_operand.vmem [shape: bf16[128,128], index: 1, kind: input, shape index: {}]   ;;  %s2406_s2 = inlined_call_operand.vmem [shape: f32[1,128], index: 2, kind: input, shape index: {}]   ;;  %s2407_s3 = inlined_call_operand.vmem [shape: bf16[2048,128], index: 3, kind: output, shape index: {}]  }
   0x1 LB: > { %s1235_s13 = sadd.s32 4294967295, %s1933_s12   ;;  %p1239_p0 = scmp.ge.s32.totalorder %s1933_s12, 1  ;;  %s1933_s12 = sphi %s1955_s12, %s13_s12  }
   0x2   : > { %p138_p1 = scmp.lt.s32.totalorder %s1933_s12, 5 }
   0x4   : > { %p139_p2 = pnand %p1239_p0, %p138_p1 }
   0x5   : > { %s1240_s22 = sshll.u32 (!%p139_p2), %s1235_s13, 6 }
   0x6   : > { %142 = sbr.rel (%p139_p2) target bundleno = 326 (0x146), region = 32  ;;  %p163_p3 = scmp.lt.s32.totalorder (!%p139_p2), %s1240_s22, 255 }
   0xb   : > { %v1445_v0 = vld [vmem:[%s2405_s1 + $0x38] sm:$0xff]  ;;  %v1444_v1 = vld [vmem:[%s2405_s1 + $0x30] sm:$0xff]  ;;  %v1443_v2 = vld [vmem:[%s2405_s1 + $0x28] sm:$0xff]  ;;  %s2409_s22 = smov (!%p163_p3, %s1240_s22), 255 }
   0xc   : > { %498 = vmatpush.bf16.msra.mxu0 %v1445_v0  ;;  %1637 = vmatpush.bf16.msra.mxu1 %v1445_v0  ;;  %v1442_v3 = vld [vmem:[%s2405_s1 + $0x20] sm:$0xff]  ;;  %v1441_v4 = vld [vmem:[%s2405_s1 + $0x18] sm:$0xff]  ;;  %v1440_v5 = vld [vmem:[%s2405_s1 + $0x10] sm:$0xff]  ;;  %s1241_s29 = sshll.u32 %s2409_s22, 2 }
   0xd   : > { %1638 = vmatpush.bf16.msra.mxu2 %v1445_v0  ;;  %1639 = vmatpush.bf16.msra.mxu3 %v1445_v0  ;;  %v1439_v6 = vld [vmem:[%s2405_s1 + $0x8] sm:$0xff]  ;;  %v1438_v7 = vld [vmem:[%s2405_s1] sm:$0xff]  ;;  %s1995_s7 = scalar_lea.vmem %s2404_s0, %s1241_s29  ;;  %s2111_s13 = scalar_lea.vmem %s2407_s3, %s1241_s29 }
   0xe   : > { %v1406_v8 = vld [vmem:[%s1995_s7] sm:$0xff]  ;;  %v1407_v12 = vld [vmem:[%s1995_s7 + $0x8] sm:$0xff]  ;;  %v1408_v16 = vld [vmem:[%s1995_s7 + $0x10] sm:$0xff] }
   0xf   : > { %v1414_v9 = vld [vmem:[%s1995_s7 + $0x40] sm:$0xff]  ;;  %v1415_v13 = vld [vmem:[%s1995_s7 + $0x48] sm:$0xff]  ;;  %v1416_v17 = vld [vmem:[%s1995_s7 + $0x50] sm:$0xff] }
  0x10   : > { %499 = vmatpush.bf16.msra.mxu0 %v1444_v1  ;;  %1640 = vmatpush.bf16.msra.mxu1 %v1444_v1  ;;  %v1422_v10 = vld [vmem:[%s1995_s7 + $0x80] sm:$0xff]  ;;  %v1423_v14 = vld [vmem:[%s1995_s7 + $0x88] sm:$0xff]  ;;  %v1424_v18 = vld [vmem:[%s1995_s7 + $0x90] sm:$0xff] }
  0x11   : > { %1641 = vmatpush.bf16.msra.mxu2 %v1444_v1  ;;  %1642 = vmatpush.bf16.msra.mxu3 %v1444_v1  ;;  %v1430_v11 = vld [vmem:[%s1995_s7 + $0xc0] sm:$0xff]  ;;  %v1431_v15 = vld [vmem:[%s1995_s7 + $0xc8] sm:$0xff]  ;;  %v1432_v19 = vld [vmem:[%s1995_s7 + $0xd0] sm:$0xff] }
  0x12   : > { %v1409_v20 = vld [vmem:[%s1995_s7 + $0x18] sm:$0xff]  ;;  %v1410_v24 = vld [vmem:[%s1995_s7 + $0x20] sm:$0xff]  ;;  %v1411_v28 = vld [vmem:[%s1995_s7 + $0x28] sm:$0xff] }
  0x13   : > { %v1417_v21 = vld [vmem:[%s1995_s7 + $0x58] sm:$0xff]  ;;  %v1418_v25 = vld [vmem:[%s1995_s7 + $0x60] sm:$0xff]  ;;  %v1419_v29 = vld [vmem:[%s1995_s7 + $0x68] sm:$0xff] }
  0x14   : > { %500 = vmatpush.bf16.msra.mxu0 %v1443_v2  ;;  %1643 = vmatpush.bf16.msra.mxu1 %v1443_v2  ;;  %v1425_v22 = vld [vmem:[%s1995_s7 + $0x98] sm:$0xff]  ;;  %v1426_v26 = vld [vmem:[%s1995_s7 + $0xa0] sm:$0xff]  ;;  %v1427_v30 = vld [vmem:[%s1995_s7 + $0xa8] sm:$0xff] }
  0x15   : > { %1644 = vmatpush.bf16.msra.mxu2 %v1443_v2  ;;  %1645 = vmatpush.bf16.msra.mxu3 %v1443_v2  ;;  %v1433_v23 = vld [vmem:[%s1995_s7 + $0xd8] sm:$0xff]  ;;  %v1434_v27 = vld [vmem:[%s1995_s7 + $0xe0] sm:$0xff]  ;;  %v1435_v31 = vld [vmem:[%s1995_s7 + $0xe8] sm:$0xff] }
  0x16   : > { %v1412_v32 = vld [vmem:[%s1995_s7 + $0x30] sm:$0xff]  ;;  %v1413_v36 = vld [vmem:[%s1995_s7 + $0x38] sm:$0xff]  ;;  %v2032_v40 = vld [vmem:[%s2406_s2] ss:$0 sm:$0xff] }
  0x17   : > { %v1420_v33 = vld [vmem:[%s1995_s7 + $0x70] sm:$0xff]  ;;  %v1421_v37 = vld [vmem:[%s1995_s7 + $0x78] sm:$0xff] }
  0x18   : > { %501 = vmatpush.bf16.msra.mxu0 %v1442_v3  ;;  %1646 = vmatpush.bf16.msra.mxu1 %v1442_v3  ;;  %v1428_v34 = vld [vmem:[%s1995_s7 + $0xb0] sm:$0xff]  ;;  %v1429_v38 = vld [vmem:[%s1995_s7 + $0xb8] sm:$0xff] }
  0x19   : > { %1647 = vmatpush.bf16.msra.mxu2 %v1442_v3  ;;  %1648 = vmatpush.bf16.msra.mxu3 %v1442_v3  ;;  %v1436_v35 = vld [vmem:[%s1995_s7 + $0xf0] sm:$0xff]  ;;  %v1437_v39 = vld [vmem:[%s1995_s7 + $0xf8] sm:$0xff] }
  0x1c   : > { %502 = vmatpush.bf16.msra.mxu0 %v1441_v4  ;;  %1649 = vmatpush.bf16.msra.mxu1 %v1441_v4 }
  0x1d   : > { %1650 = vmatpush.bf16.msra.mxu2 %v1441_v4  ;;  %1651 = vmatpush.bf16.msra.mxu3 %v1441_v4 }
  0x20   : > { %503 = vmatpush.bf16.msra.mxu0 %v1440_v5  ;;  %1652 = vmatpush.bf16.msra.mxu1 %v1440_v5 }
  0x21   : > { %1653 = vmatpush.bf16.msra.mxu2 %v1440_v5  ;;  %1654 = vmatpush.bf16.msra.mxu3 %v1440_v5 }
  0x24   : > { %504 = vmatpush.bf16.msra.mxu0 %v1439_v6  ;;  %1655 = vmatpush.bf16.msra.mxu1 %v1439_v6 }
  0x25   : > { %1656 = vmatpush.bf16.msra.mxu2 %v1439_v6  ;;  %1657 = vmatpush.bf16.msra.mxu3 %v1439_v6 }
  0x28   : > { %505 = vmatpush.bf16.msra.mxu0 %v1438_v7  ;;  %1658 = vmatpush.bf16.msra.mxu1 %v1438_v7 }
  0x29   : > { %1659 = vmatpush.bf16.msra.mxu2 %v1438_v7  ;;  %1660 = vmatpush.bf16.msra.mxu3 %v1438_v7 }
  0x2b   : > { %506 = vmatmul.bf16.vlgmr.msra.gmra.mxu0 %v1406_v8  ;;  %546 = vmatmul.bf16.vlgmr.msra.gmra.mxu1 %v1414_v9 }
  0x2c   : > { %586 = vmatmul.bf16.vlgmr.msra.gmra.mxu2 %v1422_v10  ;;  %626 = vmatmul.bf16.vlgmr.msra.gmra.mxu3 %v1430_v11 }
  0x3b   : > { %511 = vmatmul.bf16.gmra.mxu0 %v1407_v12  ;;  %551 = vmatmul.bf16.gmra.mxu1 %v1415_v13 }
  0x3c   : > { %591 = vmatmul.bf16.gmra.mxu2 %v1423_v14  ;;  %631 = vmatmul.bf16.gmra.mxu3 %v1431_v15 }
  0x4b   : > { %516 = vmatmul.bf16.gmra.mxu0 %v1408_v16  ;;  %556 = vmatmul.bf16.gmra.mxu1 %v1416_v17 }
  0x4c   : > { %596 = vmatmul.bf16.gmra.mxu2 %v1424_v18  ;;  %636 = vmatmul.bf16.gmra.mxu3 %v1432_v19 }
  0x5b   : > { %521 = vmatmul.bf16.gmra.mxu0 %v1409_v20  ;;  %561 = vmatmul.bf16.gmra.mxu1 %v1417_v21 }
  0x5c   : > { %601 = vmatmul.bf16.gmra.mxu2 %v1425_v22  ;;  %641 = vmatmul.bf16.gmra.mxu3 %v1433_v23 }
  0x6b   : > { %526 = vmatmul.bf16.gmra.mxu0 %v1410_v24  ;;  %566 = vmatmul.bf16.gmra.mxu1 %v1418_v25 }
  0x6c   : > { %606 = vmatmul.bf16.gmra.mxu2 %v1426_v26  ;;  %646 = vmatmul.bf16.gmra.mxu3 %v1434_v27 }
  0x7b   : > { %531 = vmatmul.bf16.gmra.mxu0 %v1411_v28  ;;  %571 = vmatmul.bf16.gmra.mxu1 %v1419_v29 }
  0x7c   : > { %611 = vmatmul.bf16.gmra.mxu2 %v1427_v30  ;;  %651 = vmatmul.bf16.gmra.mxu3 %v1435_v31 }
  0x8b   : > { %536 = vmatmul.bf16.gmra.mxu0 %v1412_v32  ;;  %576 = vmatmul.bf16.gmra.mxu1 %v1420_v33 }
  0x8c   : > { %616 = vmatmul.bf16.gmra.mxu2 %v1428_v34  ;;  %656 = vmatmul.bf16.gmra.mxu3 %v1436_v35 }
  0x9b   : > { %541 = vmatmul.bf16.gmra.mxu0 %v1413_v36  ;;  %581 = vmatmul.bf16.gmra.mxu1 %v1421_v37 }
  0x9c   : > { %621 = vmatmul.bf16.gmra.mxu2 %v1429_v38  ;;  %661 = vmatmul.bf16.gmra.mxu3 %v1437_v39 }
  0xa8   : > { %v507_v41 = vpop.f32.mrf.mxu0  ;;  %v547_v42 = vpop.f32.mrf.mxu1 }
  0xa9   : > { %v2035_v43 = vadd.f32 %v2032_v40, %v507_v41  ;;  %v2038_v44 = vadd.f32 %v2032_v40, %v547_v42 }
  0xab   : > { %v667_v45 = vsub.f32 0.0, %v2035_v43  ;;  %v683_v46 = vsub.f32 0.0, %v2038_v44 }
  0xad   : > { %v731_v47 = vmul.f32 1.442695, %v667_v45  ;;  %v763_v48 = vmul.f32 1.442695, %v683_v46 }
  0xaf   : > { %1670 = vpow2.f32 %v731_v47  ;;  %v587_v49 = vpop.f32.mrf.mxu2  ;;  %v627_v50 = vpop.f32.mrf.mxu3 }
  0xb0   : > { %1672 = vpow2.f32 %v763_v48  ;;  %v2043_v51 = vadd.f32 %v2032_v40, %v587_v49  ;;  %v2046_v52 = vadd.f32 %v2032_v40, %v627_v50  ;;  %v509_v53 = vpop.f32.mrf.mxu0  ;;  %v549_v54 = vpop.f32.mrf.mxu1 }
  0xb1   : > { %v2049_v55 = vadd.f32 %v2032_v40, %v509_v53  ;;  %v2052_v56 = vadd.f32 %v2032_v40, %v549_v54 }
  0xb2   : > { %v699_v57 = vsub.f32 0.0, %v2043_v51  ;;  %v715_v58 = vsub.f32 0.0, %v2046_v52 }
  0xb3   : > { %v668_v59 = vsub.f32 0.0, %v2049_v55  ;;  %v684_v60 = vsub.f32 0.0, %v2052_v56 }
  0xb4   : > { %v795_v61 = vmul.f32 1.442695, %v699_v57  ;;  %v827_v62 = vmul.f32 1.442695, %v715_v58 }
  0xb5   : > { %v1671_v63 = vpop.eup %1670  ;;  %v733_v1 = vmul.f32 1.442695, %v668_v59  ;;  %v765_v2 = vmul.f32 1.442695, %v684_v60 }
  0xb6   : > { %v1673_v0 = vpop.eup %1672  ;;  %1674 = vpow2.f32 %v795_v61  ;;  %v859_v5 = vadd.f32 1.0, %v1671_v63 }
  0xb7   : > { %1676 = vpow2.f32 %v827_v62  ;;  %v589_v3 = vpop.f32.mrf.mxu2  ;;  %v629_v4 = vpop.f32.mrf.mxu3  ;;  %v875_v10 = vadd.f32 1.0, %v1673_v0 }
  0xb8   : > { %v2059_v6 = vadd.f32 %v2032_v40, %v589_v3  ;;  %v2062_v7 = vadd.f32 %v2032_v40, %v629_v4  ;;  %v512_v8 = vpop.f32.mrf.mxu0  ;;  %v552_v9 = vpop.f32.mrf.mxu1  ;;  %1678 = vpow2.f32 %v733_v1 }
  0xb9   : > { %v2065_v11 = vadd.f32 %v2032_v40, %v512_v8  ;;  %v2068_v12 = vadd.f32 %v2032_v40, %v552_v9  ;;  %1680 = vpow2.f32 %v765_v2 }
  0xba   : > { %v700_v13 = vsub.f32 0.0, %v2059_v6  ;;  %v716_v14 = vsub.f32 0.0, %v2062_v7  ;;  %1682 = vrcp.f32 %v859_v5 }
  0xbb   : > { %v669_v15 = vsub.f32 0.0, %v2065_v11  ;;  %v685_v18 = vsub.f32 0.0, %v2068_v12  ;;  %1684 = vrcp.f32 %v875_v10 }
  0xbc   : > { %v1675_v16 = vpop.eup %1674  ;;  %v797_v17 = vmul.f32 1.442695, %v700_v13  ;;  %v829_v21 = vmul.f32 1.442695, %v716_v14 }
  0xbd   : > { %v1677_v19 = vpop.eup %1676  ;;  %v891_v20 = vadd.f32 1.0, %v1675_v16  ;;  %v735_v23 = vmul.f32 1.442695, %v669_v15  ;;  %v767_v27 = vmul.f32 1.442695, %v685_v18 }
  0xbe   : > { %v907_v22 = vadd.f32 1.0, %v1677_v19  ;;  %1686 = vpow2.f32 %v797_v17  ;;  %v1679_v26 = vpop.eup %1678 }
  0xbf   : > { %1688 = vrcp.f32 %v891_v20  ;;  %v592_v24 = vpop.f32.mrf.mxu2  ;;  %v632_v25 = vpop.f32.mrf.mxu3  ;;  %v860_v33 = vadd.f32 1.0, %v1679_v26 }
  0xc0   : > { %1690 = vrcp.f32 %v907_v22  ;;  %v2075_v28 = vadd.f32 %v2032_v40, %v592_v24  ;;  %v2078_v29 = vadd.f32 %v2032_v40, %v632_v25  ;;  %v514_v30 = vpop.f32.mrf.mxu0  ;;  %v554_v31 = vpop.f32.mrf.mxu1 }
  0xc1   : > { %v1681_v32 = vpop.eup %1680  ;;  %1692 = vpow2.f32 %v829_v21  ;;  %v2081_v34 = vadd.f32 %v2032_v40, %v514_v30  ;;  %v2084_v35 = vadd.f32 %v2032_v40, %v554_v31 }
  0xc2   : > { %v1683_v36 = vpop.eup %1682  ;;  %v876_v37 = vadd.f32 1.0, %v1681_v32  ;;  %1694 = vpow2.f32 %v735_v23  ;;  %v701_v38 = vsub.f32 0.0, %v2075_v28  ;;  %v717_v39 = vsub.f32 0.0, %v2078_v29 }
  0xc3   : > { %v1685_v41 = vpop.eup %1684  ;;  %1696 = vrcp.f32 %v860_v33  ;;  %v670_v42 = vsub.f32 0.0, %v2081_v34  ;;  %v686_v45 = vsub.f32 0.0, %v2084_v35  ;;  %v987_v4 = vmul.f32 %v1683_v36, %v2035_v43 }
  0xc4   : > { %v1687_v46 = vpop.eup %1686  ;;  %1698 = vrcp.f32 %v876_v37  ;;  %v799_v47 = vmul.f32 1.442695, %v701_v38  ;;  %v831_v48 = vmul.f32 1.442695, %v717_v39  ;;  %v1003_v16 = vmul.f32 %v1685_v41, %v2038_v44 }
  0xc5   : > { %v1689_v49 = vpop.eup %1688  ;;  %v892_v50 = vadd.f32 1.0, %v1687_v46  ;;  %1700 = vpow2.f32 %v767_v27  ;;  %v737_v53 = vmul.f32 1.442695, %v670_v42  ;;  %v769_v58 = vmul.f32 1.442695, %v686_v45 }
  0xc6   : > { %v1691_v54 = vpop.eup %1690  ;;  %1702 = vpow2.f32 %v799_v47  ;;  %v1019_v22 = vmul.f32 %v1689_v49, %v2043_v51 }
  0xc7   : > { %v1693_v57 = vpop.eup %1692  ;;  %1704 = vrcp.f32 %v892_v50  ;;  %v594_v59 = vpop.f32.mrf.mxu2  ;;  %v1035_v26 = vmul.f32 %v1691_v54, %v2046_v52 }
  0xc8   : > { %v634_v60 = vpop.f32.mrf.mxu3  ;;  %v1695_v61 = vpop.eup %1694  ;;  %v908_v62 = vadd.f32 1.0, %v1693_v57  ;;  %1706 = vpow2.f32 %v831_v48  ;;  %v2091_v63 = vadd.f32 %v2032_v40, %v594_v59 }
  0xc9   : > { %v2094_v0 = vadd.f32 %v2032_v40, %v634_v60  ;;  %v517_v1 = vpop.f32.mrf.mxu0  ;;  %v557_v2 = vpop.f32.mrf.mxu1  ;;  %v861_v5 = vadd.f32 1.0, %v1695_v61  ;;  %1708 = vpow2.f32 %v737_v53 }
  0xca   : > { %v1697_v3 = vpop.eup %1696  ;;  %v2098_v8 = vadd.f32 %v2032_v40, %v517_v1  ;;  %1710 = vrcp.f32 %v908_v62  ;;  %v702_v13 = vsub.f32 0.0, %v2091_v63  ;;  %v2103_v14 = vadd.f32 %v2032_v40, %v557_v2 }
  0xcb   : > { %v1699_v9 = vpop.eup %1698  ;;  %v988_v10 = vmul.f32 %v1697_v3, %v2049_v55  ;;  %v718_v55 = vsub.f32 0.0, %v2094_v0  ;;  %1712 = vpow2.f32 %v769_v58 }
  0xcc   : > { %v1701_v15 = vpop.eup %1700  ;;  %v1004_v43 = vmul.f32 %v1699_v9, %v2052_v56  ;;  %v671_v17 = vsub.f32 0.0, %v2098_v8  ;;  %v801_v21 = vmul.f32 1.442695, %v702_v13  ;;  %1714 = vrcp.f32 %v861_v5 }
  0xcd   : > { %v1703_v18 = vpop.eup %1702  ;;  %v1449_v19 = vpack.c.bf16 %v988_v10, %v987_v4  ;;  %v877_v20 = vadd.f32 1.0, %v1701_v15  ;;  %v687_v27 = vsub.f32 0.0, %v2103_v14  ;;  %v833_v32 = vmul.f32 1.442695, %v718_v55 }
  0xce   : > { %v1705_v44 = vpop.eup %1704  ;;  %v1489_v23 = vpack.c.bf16 %v1004_v43, %v1003_v16  ;;  %v893_v24 = vadd.f32 1.0, %v1703_v18  ;;  %v739_v33 = vmul.f32 1.442695, %v671_v17 }
  0xcf   : > { %v1707_v25 = vpop.eup %1706  ;;  %1450 = vst [vmem:[%s2111_s13] sm:$0xff] %v1449_v19   ;;  %v1020_v56 = vmul.f32 %v1705_v44, %v2059_v6  ;;  %1716 = vrcp.f32 %v877_v20  ;;  %v597_v51 = vpop.f32.mrf.mxu2  ;;  %v771_v48 = vmul.f32 1.442695, %v687_v27 }
  0xd0   : > { %v1709_v30 = vpop.eup %1708  ;;  %1613 = vst [vmem:[%s2111_s13 + $0x40] sm:$0xff] %v1489_v23   ;;  %1718 = vrcp.f32 %v893_v24  ;;  %v909_v31 = vadd.f32 1.0, %v1707_v25  ;;  %v637_v36 = vpop.f32.mrf.mxu3  ;;  %v2123_v52 = vadd.f32 %v2032_v40, %v597_v51 }
  0xd1   : > { %v1711_v37 = vpop.eup %1710  ;;  %v1529_v38 = vpack.c.bf16 %v1020_v56, %v1019_v22  ;;  %v862_v39 = vadd.f32 1.0, %v1709_v30  ;;  %1720 = vpow2.f32 %v801_v21  ;;  %v519_v6 = vpop.f32.mrf.mxu0  ;;  %v2127_v45 = vadd.f32 %v2032_v40, %v637_v36 }
  0xd2   : > { %v559_v41 = vpop.f32.mrf.mxu1  ;;  %v1036_v42 = vmul.f32 %v1711_v37, %v2062_v7  ;;  %1722 = vrcp.f32 %v909_v31  ;;  %v2130_v46 = vadd.f32 %v2032_v40, %v519_v6  ;;  %v1713_v47 = vpop.eup %1712  ;;  %v703_v49 = vsub.f32 0.0, %v2123_v52 }
  0xd3   : > { %1621 = vst [vmem:[%s2111_s13 + $0x80] sm:$0xff] %v1529_v38   ;;  %1724 = vrcp.f32 %v862_v39  ;;  %v2135_v50 = vadd.f32 %v2032_v40, %v559_v41  ;;  %v1715_v53 = vpop.eup %1714  ;;  %v878_v7 = vadd.f32 1.0, %v1713_v47  ;;  %v719_v57 = vsub.f32 0.0, %v2127_v45 }
  0xd4   : > { %v1569_v54 = vpack.c.bf16 %v1036_v42, %v1035_v26  ;;  %1726 = vpow2.f32 %v833_v32  ;;  %v803_v59 = vmul.f32 1.442695, %v703_v49  ;;  %v672_v60 = vsub.f32 0.0, %v2130_v46 }
  0xd5   : > { %v1717_v58 = vpop.eup %1716  ;;  %1728 = vpow2.f32 %v739_v33  ;;  %v688_v61 = vsub.f32 0.0, %v2135_v50  ;;  %v835_v1 = vmul.f32 1.442695, %v719_v57  ;;  %v989_v5 = vmul.f32 %v1715_v53, %v2065_v11 }
  0xd6   : > { %v1719_v62 = vpop.eup %1718  ;;  %1629 = vst [vmem:[%s2111_s13 + $0xc0] sm:$0xff] %v1569_v54   ;;  %1730 = vrcp.f32 %v878_v7  ;;  %v741_v3 = vmul.f32 1.442695, %v672_v60  ;;  %v1005_v43 = vmul.f32 %v1717_v58, %v2068_v12 }
  0xd7   : > { %v1721_v2 = vpop.eup %1720  ;;  %1732 = vpow2.f32 %v771_v48  ;;  %v773_v10 = vmul.f32 1.442695, %v688_v61  ;;  %v599_v13 = vpop.f32.mrf.mxu2  ;;  %v1021_v30 = vmul.f32 %v1719_v62, %v2075_v28 }
  0xd8   : > { %v1723_v4 = vpop.eup %1722  ;;  %v894_v9 = vadd.f32 1.0, %v1721_v2  ;;  %1734 = vpow2.f32 %v803_v59  ;;  %v639_v15 = vpop.f32.mrf.mxu3  ;;  %v2144_v55 = vadd.f32 %v2032_v40, %v599_v13 }
  0xd9   : > { %v1725_v16 = vpop.eup %1724  ;;  %1736 = vpow2.f32 %v835_v1  ;;  %v2147_v17 = vadd.f32 %v2032_v40, %v639_v15  ;;  %v522_v18 = vpop.f32.mrf.mxu0  ;;  %v1037_v51 = vmul.f32 %v1723_v4, %v2078_v29 }
  0xda   : > { %v562_v19 = vpop.f32.mrf.mxu1  ;;  %v1727_v20 = vpop.eup %1726  ;;  %v990_v11 = vmul.f32 %v1725_v16, %v2081_v34  ;;  %1738 = vrcp.f32 %v894_v9  ;;  %v2151_v21 = vadd.f32 %v2032_v40, %v522_v18  ;;  %v704_v23 = vsub.f32 0.0, %v2144_v55 }
  0xdb   : > { %v2154_v44 = vadd.f32 %v2032_v40, %v562_v19  ;;  %v1729_v12 = vpop.eup %1728  ;;  %v910_v22 = vadd.f32 1.0, %v1727_v20  ;;  %1740 = vpow2.f32 %v741_v3  ;;  %v720_v24 = vsub.f32 0.0, %v2147_v17 }
  0xdc   : > { %v1731_v25 = vpop.eup %1730  ;;  %v1454_v26 = vpack.c.bf16 %v990_v11, %v989_v5  ;;  %v863_v56 = vadd.f32 1.0, %v1729_v12  ;;  %1742 = vpow2.f32 %v773_v10  ;;  %v673_v34 = vsub.f32 0.0, %v2151_v21 }
  0xdd   : > { %v1733_v27 = vpop.eup %1732  ;;  %v1006_v31 = vmul.f32 %v1731_v25, %v2084_v35  ;;  %1744 = vrcp.f32 %v910_v22  ;;  %v805_v32 = vmul.f32 1.442695, %v704_v23  ;;  %v689_v37 = vsub.f32 0.0, %v2154_v44 }
  0xde   : > { %v1735_v33 = vpop.eup %1734  ;;  %1606 = vst [vmem:[%s2111_s13 + $0x8] sm:$0xff] %v1454_v26   ;;  %1746 = vrcp.f32 %v863_v56  ;;  %v879_v36 = vadd.f32 1.0, %v1733_v27  ;;  %v837_v41 = vmul.f32 1.442695, %v720_v24  ;;  %v743_v35 = vmul.f32 1.442695, %v673_v34 }
  0xdf   : > { %v1737_v38 = vpop.eup %1736  ;;  %v1494_v39 = vpack.c.bf16 %v1006_v31, %v1005_v43  ;;  %v895_v6 = vadd.f32 1.0, %v1735_v33  ;;  %1748 = vpow2.f32 %v805_v32  ;;  %v775_v47 = vmul.f32 1.442695, %v689_v37  ;;  %v602_v48 = vpop.f32.mrf.mxu2 }
  0xe0   : > { %v1739_v42 = vpop.eup %1738  ;;  %1750 = vrcp.f32 %v879_v36  ;;  %v911_v28 = vadd.f32 1.0, %v1737_v38  ;;  %v642_v49 = vpop.f32.mrf.mxu3  ;;  %v2167_v54 = vadd.f32 %v2032_v40, %v602_v48 }
  0xe1   : > { %v1741_v53 = vpop.eup %1740  ;;  %1614 = vst [vmem:[%s2111_s13 + $0x48] sm:$0xff] %v1494_v39   ;;  %v1022_v29 = vmul.f32 %v1739_v42, %v2091_v63  ;;  %1752 = vrcp.f32 %v895_v6  ;;  %v2170_v7 = vadd.f32 %v2032_v40, %v642_v49  ;;  %v524_v57 = vpop.f32.mrf.mxu0 }
  0xe2   : > { %v564_v58 = vpop.f32.mrf.mxu1  ;;  %v1743_v59 = vpop.eup %1742  ;;  %1754 = vrcp.f32 %v911_v28  ;;  %v864_v60 = vadd.f32 1.0, %v1741_v53  ;;  %v2173_v61 = vadd.f32 %v2032_v40, %v524_v57  ;;  %v705_v3 = vsub.f32 0.0, %v2167_v54 }
  0xe3   : > { %v2176_v62 = vadd.f32 %v2032_v40, %v564_v58  ;;  %v1745_v63 = vpop.eup %1744  ;;  %v1534_v1 = vpack.c.bf16 %v1022_v29, %v1021_v30  ;;  %v880_v2 = vadd.f32 1.0, %v1743_v59  ;;  %1756 = vpow2.f32 %v837_v41 }
  0xe4   : > { %v1747_v4 = vpop.eup %1746  ;;  %v1038_v5 = vmul.f32 %v1745_v63, %v2094_v0  ;;  %1758 = vrcp.f32 %v864_v60  ;;  %v721_v9 = vsub.f32 0.0, %v2170_v7  ;;  %v674_v10 = vsub.f32 0.0, %v2173_v61 }
  0xe5   : > { %v1749_v13 = vpop.eup %1748  ;;  %1622 = vst [vmem:[%s2111_s13 + $0x88] sm:$0xff] %v1534_v1   ;;  %1760 = vrcp.f32 %v880_v2  ;;  %v807_v15 = vmul.f32 1.442695, %v705_v3  ;;  %v690_v16 = vsub.f32 0.0, %v2176_v62  ;;  %v991_v22 = vmul.f32 %v1747_v4, %v2098_v8 }
  0xe6   : > { %v1751_v43 = vpop.eup %1750  ;;  %v1574_v18 = vpack.c.bf16 %v1038_v5, %v1037_v51  ;;  %v896_v19 = vadd.f32 1.0, %v1749_v13  ;;  %1762 = vpow2.f32 %v743_v35  ;;  %v839_v20 = vmul.f32 1.442695, %v721_v9 }
  0xe7   : > { %v1753_v11 = vpop.eup %1752  ;;  %1764 = vpow2.f32 %v775_v47  ;;  %v745_v0 = vmul.f32 1.442695, %v674_v10  ;;  %v1007_v23 = vmul.f32 %v1751_v43, %v2103_v14  ;;  %v604_v24 = vpop.f32.mrf.mxu2  ;;  %v777_v56 = vmul.f32 1.442695, %v690_v16 }
  0xe8   : > { %v1755_v12 = vpop.eup %1754  ;;  %1630 = vst [vmem:[%s2111_s13 + $0xc8] sm:$0xff] %v1574_v18   ;;  %1766 = vrcp.f32 %v896_v19  ;;  %v644_v25 = vpop.f32.mrf.mxu3  ;;  %v2188_v34 = vadd.f32 %v2032_v40, %v604_v24  ;;  %v1023_v49 = vmul.f32 %v1753_v11, %v2123_v52 }
  0xe9   : > { %v1757_v26 = vpop.eup %1756  ;;  %1768 = vpow2.f32 %v807_v15  ;;  %v2191_v27 = vadd.f32 %v2032_v40, %v644_v25  ;;  %v527_v30 = vpop.f32.mrf.mxu0  ;;  %v1039_v58 = vmul.f32 %v1755_v12, %v2127_v45 }
  0xea   : > { %v567_v31 = vpop.f32.mrf.mxu1  ;;  %v1759_v32 = vpop.eup %1758  ;;  %v912_v33 = vadd.f32 1.0, %v1757_v26  ;;  %1770 = vpow2.f32 %v839_v20  ;;  %v2194_v8 = vadd.f32 %v2032_v40, %v527_v30  ;;  %v706_v37 = vsub.f32 0.0, %v2188_v34 }
  0xeb   : > { %v2197_v14 = vadd.f32 %v2032_v40, %v567_v31  ;;  %v1761_v51 = vpop.eup %1760  ;;  %v992_v36 = vmul.f32 %v1759_v32, %v2130_v46  ;;  %1772 = vpow2.f32 %v745_v0  ;;  %v722_v38 = vsub.f32 0.0, %v2191_v27 }
  0xec   : > { %v1763_v39 = vpop.eup %1762  ;;  %v1008_v6 = vmul.f32 %v1761_v51, %v2135_v50  ;;  %1774 = vrcp.f32 %v912_v33  ;;  %v675_v41 = vsub.f32 0.0, %v2194_v8  ;;  %v809_v46 = vmul.f32 1.442695, %v706_v37 }
  0xed   : > { %v691_v42 = vsub.f32 0.0, %v2197_v14  ;;  %v1765_v28 = vpop.eup %1764  ;;  %v1459_v35 = vpack.c.bf16 %v992_v36, %v991_v22  ;;  %v865_v47 = vadd.f32 1.0, %v1763_v39  ;;  %1776 = vpow2.f32 %v777_v56 }
  0xee   : > { %v1767_v48 = vpop.eup %1766  ;;  %v1499_v53 = vpack.c.bf16 %v1008_v6, %v1007_v23  ;;  %v881_v29 = vadd.f32 1.0, %v1765_v28  ;;  %v841_v59 = vmul.f32 1.442695, %v722_v38  ;;  %v747_v1 = vmul.f32 1.442695, %v675_v41 }
  0xef   : > { %v1769_v57 = vpop.eup %1768  ;;  %1607 = vst [vmem:[%s2111_s13 + $0x10] sm:$0xff] %v1459_v35   ;;  %v1024_v50 = vmul.f32 %v1767_v48, %v2144_v55  ;;  %1778 = vrcp.f32 %v865_v47  ;;  %v779_v2 = vmul.f32 1.442695, %v691_v42  ;;  %v607_v3 = vpop.f32.mrf.mxu2 }
  0xf0   : > { %v1771_v60 = vpop.eup %1770  ;;  %1615 = vst [vmem:[%s2111_s13 + $0x50] sm:$0xff] %v1499_v53   ;;  %1780 = vrcp.f32 %v881_v29  ;;  %v897_v63 = vadd.f32 1.0, %v1769_v57  ;;  %v647_v4 = vpop.f32.mrf.mxu3  ;;  %v2211_v45 = vadd.f32 %v2032_v40, %v607_v3 }
  0xf1   : > { %v1773_v52 = vpop.eup %1772  ;;  %v1539_v5 = vpack.c.bf16 %v1024_v50, %v1023_v49  ;;  %v913_v9 = vadd.f32 1.0, %v1771_v60  ;;  %1782 = vpow2.f32 %v809_v46  ;;  %v529_v10 = vpop.f32.mrf.mxu0  ;;  %v2214_v16 = vadd.f32 %v2032_v40, %v647_v4 }
  0xf2   : > { %v569_v55 = vpop.f32.mrf.mxu1  ;;  %v1775_v13 = vpop.eup %1774  ;;  %1784 = vrcp.f32 %v897_v63  ;;  %v866_v15 = vadd.f32 1.0, %v1773_v52  ;;  %v2217_v43 = vadd.f32 %v2032_v40, %v529_v10  ;;  %v707_v20 = vsub.f32 0.0, %v2211_v45 }
  0xf3   : > { %v1777_v18 = vpop.eup %1776  ;;  %1623 = vst [vmem:[%s2111_s13 + $0x90] sm:$0xff] %v1539_v5   ;;  %v1040_v19 = vmul.f32 %v1775_v13, %v2147_v17  ;;  %1786 = vrcp.f32 %v913_v9  ;;  %v2223_v11 = vadd.f32 %v2032_v40, %v569_v55  ;;  %v723_v12 = vsub.f32 0.0, %v2214_v16 }
  0xf4   : > { %1788 = vrcp.f32 %v866_v15  ;;  %v882_v0 = vadd.f32 1.0, %v1777_v18  ;;  %v676_v22 = vsub.f32 0.0, %v2217_v43  ;;  %v811_v25 = vmul.f32 1.442695, %v707_v20 }
  0xf5   : > { %v1779_v23 = vpop.eup %1778  ;;  %v1579_v24 = vpack.c.bf16 %v1040_v19, %v1039_v58  ;;  %1790 = vpow2.f32 %v841_v59  ;;  %v692_v26 = vsub.f32 0.0, %v2223_v11  ;;  %v843_v30 = vmul.f32 1.442695, %v723_v12 }
  0xf6   : > { %v1781_v17 = vpop.eup %1780  ;;  %1792 = vrcp.f32 %v882_v0  ;;  %v749_v33 = vmul.f32 1.442695, %v676_v22  ;;  %v993_v35 = vmul.f32 %v1779_v23, %v2151_v21 }
  0xf7   : > { %v1783_v56 = vpop.eup %1782  ;;  %1631 = vst [vmem:[%s2111_s13 + $0xd0] sm:$0xff] %v1579_v24   ;;  %1794 = vpow2.f32 %v747_v1  ;;  %v609_v51 = vpop.f32.mrf.mxu2  ;;  %v781_v38 = vmul.f32 1.442695, %v692_v26  ;;  %v1009_v47 = vmul.f32 %v1781_v17, %v2154_v44 }
  0xf8   : > { %v1785_v31 = vpop.eup %1784  ;;  %v898_v32 = vadd.f32 1.0, %v1783_v56  ;;  %1796 = vpow2.f32 %v779_v2  ;;  %v649_v36 = vpop.f32.mrf.mxu3  ;;  %v2232_v39 = vadd.f32 %v2032_v40, %v609_v51 }
  0xf9   : > { %v2229_v37 = vpop.eup %1786  ;;  %1798 = vpow2.f32 %v811_v25  ;;  %v2235_v6 = vadd.f32 %v2032_v40, %v649_v36  ;;  %v532_v41 = vpop.f32.mrf.mxu0  ;;  %v1025_v1 = vmul.f32 %v1785_v31, %v2167_v54 }
  0xfa   : > { %v572_v42 = vpop.f32.mrf.mxu1  ;;  %v1789_v28 = vpop.eup %1788  ;;  %1800 = vrcp.f32 %v898_v32  ;;  %v2240_v46 = vadd.f32 %v2032_v40, %v532_v41  ;;  %v708_v53 = vsub.f32 0.0, %v2232_v39  ;;  %v1041_v36 = vmul.f32 %v2229_v37, %v2170_v7 }
  0xfb   : > { %v1791_v48 = vpop.eup %1790  ;;  %v994_v49 = vmul.f32 %v1789_v28, %v2173_v61  ;;  %1802 = vpow2.f32 %v843_v30  ;;  %v724_v29 = vsub.f32 0.0, %v2235_v6  ;;  %v2247_v44 = vadd.f32 %v2032_v40, %v572_v42 }
  0xfc   : > { %v1793_v57 = vpop.eup %1792  ;;  %v914_v58 = vadd.f32 1.0, %v1791_v48  ;;  %1804 = vpow2.f32 %v749_v33  ;;  %v677_v21 = vsub.f32 0.0, %v2240_v46  ;;  %v813_v61 = vmul.f32 1.442695, %v708_v53 }
  0xfd   : > { %v1795_v50 = vpop.eup %1794  ;;  %v1464_v59 = vpack.c.bf16 %v994_v49, %v993_v35  ;;  %v1010_v60 = vmul.f32 %v1793_v57, %v2176_v62  ;;  %1806 = vpow2.f32 %v781_v38  ;;  %v845_v5 = vmul.f32 1.442695, %v724_v29 }
  0xfe   : > { %v1797_v63 = vpop.eup %1796  ;;  %1808 = vrcp.f32 %v914_v58  ;;  %v867_v2 = vadd.f32 1.0, %v1795_v50  ;;  %v751_v55 = vmul.f32 1.442695, %v677_v21  ;;  %v693_v62 = vsub.f32 0.0, %v2247_v44 }
  0xff   : > { %v1799_v3 = vpop.eup %1798  ;;  %1608 = vst [vmem:[%s2111_s13 + $0x18] sm:$0xff] %v1464_v59   ;;  %v1504_v4 = vpack.c.bf16 %v1010_v60, %v1009_v47  ;;  %v883_v52 = vadd.f32 1.0, %v1797_v63  ;;  %1810 = vpow2.f32 %v813_v61  ;;  %v612_v13 = vpop.f32.mrf.mxu2 }
 0x100   : > { %v1801_v9 = vpop.eup %1800  ;;  %1812 = vrcp.f32 %v867_v2  ;;  %v899_v10 = vadd.f32 1.0, %v1799_v3  ;;  %v652_v15 = vpop.f32.mrf.mxu3  ;;  %v2256_v19 = vadd.f32 %v2032_v40, %v612_v13  ;;  %v783_v41 = vmul.f32 1.442695, %v693_v62 }
 0x101   : > { %v1803_v18 = vpop.eup %1802  ;;  %1616 = vst [vmem:[%s2111_s13 + $0x58] sm:$0xff] %v1504_v4   ;;  %v1026_v54 = vmul.f32 %v1801_v9, %v2188_v34  ;;  %1814 = vrcp.f32 %v883_v52  ;;  %v2259_v20 = vadd.f32 %v2032_v40, %v652_v15  ;;  %v534_v0 = vpop.f32.mrf.mxu0 }
 0x102   : > { %v574_v12 = vpop.f32.mrf.mxu1  ;;  %v1805_v22 = vpop.eup %1804  ;;  %1816 = vrcp.f32 %v899_v10  ;;  %v915_v23 = vadd.f32 1.0, %v1803_v18  ;;  %v2262_v24 = vadd.f32 %v2032_v40, %v534_v0  ;;  %v709_v56 = vsub.f32 0.0, %v2256_v19 }
 0x103   : > { %v2265_v25 = vadd.f32 %v2032_v40, %v574_v12  ;;  %v1807_v34 = vpop.eup %1806  ;;  %v1544_v26 = vpack.c.bf16 %v1026_v54, %v1025_v1  ;;  %v868_v17 = vadd.f32 1.0, %v1805_v22  ;;  %1818 = vpow2.f32 %v845_v5 }
 0x104   : > { %v1809_v30 = vpop.eup %1808  ;;  %1820 = vrcp.f32 %v915_v23  ;;  %v884_v31 = vadd.f32 1.0, %v1807_v34  ;;  %v725_v32 = vsub.f32 0.0, %v2259_v20  ;;  %v678_v33 = vsub.f32 0.0, %v2262_v24 }
 0x105   : > { %v1811_v51 = vpop.eup %1810  ;;  %1624 = vst [vmem:[%s2111_s13 + $0x98] sm:$0xff] %v1544_v26   ;;  %v1042_v38 = vmul.f32 %v1809_v30, %v2191_v27  ;;  %1822 = vrcp.f32 %v868_v17  ;;  %v815_v35 = vmul.f32 1.442695, %v709_v56  ;;  %v694_v47 = vsub.f32 0.0, %v2265_v25 }
 0x106   : > { %v1813_v42 = vpop.eup %1812  ;;  %1824 = vrcp.f32 %v884_v31  ;;  %v900_v28 = vadd.f32 1.0, %v1811_v51  ;;  %v847_v53 = vmul.f32 1.442695, %v725_v32  ;;  %v753_v57 = vmul.f32 1.442695, %v678_v33 }
 0x107   : > { %v1815_v48 = vpop.eup %1814  ;;  %v1584_v49 = vpack.c.bf16 %v1042_v38, %v1041_v36  ;;  %1826 = vpow2.f32 %v751_v55  ;;  %v614_v7 = vpop.f32.mrf.mxu2  ;;  %v995_v27 = vmul.f32 %v1813_v42, %v2194_v8  ;;  %v785_v1 = vmul.f32 1.442695, %v694_v47 }
 0x108   : > { %v1817_v29 = vpop.eup %1816  ;;  %1828 = vrcp.f32 %v900_v28  ;;  %v654_v37 = vpop.f32.mrf.mxu3  ;;  %v2278_v21 = vadd.f32 %v2032_v40, %v614_v7  ;;  %v1011_v4 = vmul.f32 %v1815_v48, %v2197_v14 }
 0x109   : > { %v1819_v58 = vpop.eup %1818  ;;  %1632 = vst [vmem:[%s2111_s13 + $0xd8] sm:$0xff] %v1584_v49   ;;  %1830 = vpow2.f32 %v783_v41  ;;  %v2281_v50 = vadd.f32 %v2032_v40, %v654_v37  ;;  %v537_v59 = vpop.f32.mrf.mxu0  ;;  %v1027_v54 = vmul.f32 %v1817_v29, %v2211_v45 }
 0x10a   : > { %v577_v60 = vpop.f32.mrf.mxu1  ;;  %v1821_v61 = vpop.eup %1820  ;;  %v916_v63 = vadd.f32 1.0, %v1819_v58  ;;  %1832 = vpow2.f32 %v815_v35  ;;  %v2284_v2 = vadd.f32 %v2032_v40, %v537_v59  ;;  %v710_v8 = vsub.f32 0.0, %v2278_v21 }
 0x10b   : > { %v1823_v3 = vpop.eup %1822  ;;  %1834 = vpow2.f32 %v847_v53  ;;  %v726_v52 = vsub.f32 0.0, %v2281_v50  ;;  %v2292_v55 = vadd.f32 %v2032_v40, %v577_v60  ;;  %v1043_v22 = vmul.f32 %v1821_v61, %v2214_v16 }
 0x10c   : > { %v1825_v5 = vpop.eup %1824  ;;  %v996_v9 = vmul.f32 %v1823_v3, %v2217_v43  ;;  %1836 = vrcp.f32 %v916_v63  ;;  %v679_v10 = vsub.f32 0.0, %v2284_v2  ;;  %v817_v14 = vmul.f32 1.442695, %v710_v8 }
 0x10d   : > { %v1827_v62 = vpop.eup %1826  ;;  %v1012_v13 = vmul.f32 %v1825_v5, %v2223_v11  ;;  %1838 = vpow2.f32 %v753_v57  ;;  %v849_v15 = vmul.f32 1.442695, %v726_v52  ;;  %v695_v56 = vsub.f32 0.0, %v2292_v55 }
 0x10e   : > { %v1829_v18 = vpop.eup %1828  ;;  %v1469_v0 = vpack.c.bf16 %v996_v9, %v995_v27  ;;  %v869_v12 = vadd.f32 1.0, %v1827_v62  ;;  %1840 = vpow2.f32 %v785_v1  ;;  %v755_v17 = vmul.f32 1.442695, %v679_v10  ;;  %v2325_v62 = vld [vmem:[%s2406_s2] ss:$0 sm:$0xff] }
 0x10f   : > { %v1831_v43 = vpop.eup %1830  ;;  %v1509_v23 = vpack.c.bf16 %v1012_v13, %v1011_v4  ;;  %v1028_v34 = vmul.f32 %v1829_v18, %v2232_v39  ;;  %1842 = vpow2.f32 %v817_v14  ;;  %v617_v30 = vpop.f32.mrf.mxu2  ;;  %v787_v27 = vmul.f32 1.442695, %v695_v56 }
 0x110   : > { %v1833_v26 = vpop.eup %1832  ;;  %1609 = vst [vmem:[%s2111_s13 + $0x20] sm:$0xff] %v1469_v0   ;;  %1844 = vrcp.f32 %v869_v12  ;;  %v885_v11 = vadd.f32 1.0, %v1831_v43  ;;  %v657_v45 = vpop.f32.mrf.mxu3  ;;  %v2302_v16 = vadd.f32 %v2032_v40, %v617_v30 }
 0x111   : > { %v1835_v31 = vpop.eup %1834  ;;  %1617 = vst [vmem:[%s2111_s13 + $0x60] sm:$0xff] %v1509_v23   ;;  %v1549_v32 = vpack.c.bf16 %v1028_v34, %v1027_v54  ;;  %v901_v33 = vadd.f32 1.0, %v1833_v26  ;;  %1846 = vpow2.f32 %v849_v15  ;;  %v539_v39 = vpop.f32.mrf.mxu0  ;;  %v2305_v41 = vadd.f32 %v2032_v40, %v657_v45 }
 0x112   : > { %v579_v51 = vpop.f32.mrf.mxu1  ;;  %v1837_v36 = vpop.eup %1836  ;;  %1848 = vrcp.f32 %v885_v11  ;;  %v917_v38 = vadd.f32 1.0, %v1835_v31  ;;  %v2308_v42 = vadd.f32 %v2032_v40, %v539_v39  ;;  %v711_v47 = vsub.f32 0.0, %v2302_v16 }
 0x113   : > { %v1839_v28 = vpop.eup %1838  ;;  %1625 = vst [vmem:[%s2111_s13 + $0xa0] sm:$0xff] %v1549_v32   ;;  %v1044_v35 = vmul.f32 %v1837_v36, %v2235_v6  ;;  %1850 = vrcp.f32 %v901_v33  ;;  %v2314_v48 = vadd.f32 %v2032_v40, %v579_v51  ;;  %v727_v29 = vsub.f32 0.0, %v2305_v41 }
 0x114   : > { %v1841_v49 = vpop.eup %1840  ;;  %1852 = vrcp.f32 %v917_v38  ;;  %v870_v53 = vadd.f32 1.0, %v1839_v28  ;;  %v680_v57 = vsub.f32 0.0, %v2308_v42  ;;  %v819_v40 = vmul.f32 1.442695, %v711_v47 }
 0x115   : > { %v1843_v7 = vpop.eup %1842  ;;  %v1589_v37 = vpack.c.bf16 %v1044_v35, %v1043_v22  ;;  %v886_v58 = vadd.f32 1.0, %v1841_v49  ;;  %1854 = vpow2.f32 %v755_v17  ;;  %v696_v61 = vsub.f32 0.0, %v2314_v48 }
 0x116   : > { %v1845_v6 = vpop.eup %1844  ;;  %1856 = vrcp.f32 %v870_v53  ;;  %v902_v59 = vadd.f32 1.0, %v1843_v7  ;;  %v851_v3 = vmul.f32 1.442695, %v727_v29  ;;  %v757_v4 = vmul.f32 1.442695, %v680_v57 }
 0x117   : > { %v1847_v60 = vpop.eup %1846  ;;  %1633 = vst [vmem:[%s2111_s13 + $0xe0] sm:$0xff] %v1589_v37   ;;  %1858 = vrcp.f32 %v886_v58  ;;  %v619_v8 = vpop.f32.mrf.mxu2  ;;  %v997_v9 = vmul.f32 %v1845_v6, %v2240_v46  ;;  %v789_v54 = vmul.f32 1.442695, %v696_v61 }
 0x118   : > { %v1849_v63 = vpop.eup %1848  ;;  %1860 = vrcp.f32 %v902_v59  ;;  %v918_v1 = vadd.f32 1.0, %v1847_v60  ;;  %v659_v52 = vpop.f32.mrf.mxu3  ;;  %v2328_v13 = vadd.f32 %v2325_v62, %v619_v8 }
 0x119   : > { %v1851_v5 = vpop.eup %1850  ;;  %v1013_v10 = vmul.f32 %v1849_v63, %v2247_v44  ;;  %1862 = vpow2.f32 %v787_v27  ;;  %v542_v14 = vpop.f32.mrf.mxu0  ;;  %v2331_v0 = vadd.f32 %v2325_v62, %v659_v52 }
 0x11a   : > { %v582_v15 = vpop.f32.mrf.mxu1  ;;  %v1853_v18 = vpop.eup %1852  ;;  %1864 = vrcp.f32 %v918_v1  ;;  %v2334_v46 = vadd.f32 %v2325_v62, %v542_v14  ;;  %v1029_v12 = vmul.f32 %v1851_v5, %v2256_v19  ;;  %v712_v43 = vsub.f32 0.0, %v2328_v13 }
 0x11b   : > { %v1855_v44 = vpop.eup %1854  ;;  %1866 = vpow2.f32 %v819_v40  ;;  %v2339_v22 = vadd.f32 %v2325_v62, %v582_v15  ;;  %v728_v26 = vsub.f32 0.0, %v2331_v0  ;;  %v1045_v31 = vmul.f32 %v1853_v18, %v2259_v20 }
 0x11c   : > { %v1857_v23 = vpop.eup %1856  ;;  %v871_v34 = vadd.f32 1.0, %v1855_v44  ;;  %1868 = vpow2.f32 %v851_v3  ;;  %v681_v11 = vsub.f32 0.0, %v2334_v46  ;;  %v821_v30 = vmul.f32 1.442695, %v712_v43 }
 0x11d   : > { %v1859_v17 = vpop.eup %1858  ;;  %v998_v56 = vmul.f32 %v1857_v23, %v2262_v24  ;;  %1870 = vpow2.f32 %v757_v4  ;;  %v697_v19 = vsub.f32 0.0, %v2339_v22  ;;  %v853_v33 = vmul.f32 1.442695, %v728_v26 }
 0x11e   : > { %v1861_v45 = vpop.eup %1860  ;;  %v1014_v32 = vmul.f32 %v1859_v17, %v2265_v25  ;;  %1872 = vrcp.f32 %v871_v34  ;;  %v759_v38 = vmul.f32 1.442695, %v681_v11 }
 0x11f   : > { %v1863_v39 = vpop.eup %1862  ;;  %v1474_v51 = vpack.c.bf16 %v998_v56, %v997_v9  ;;  %v1030_v36 = vmul.f32 %v1861_v45, %v2278_v21  ;;  %1874 = vpow2.f32 %v789_v54  ;;  %v791_v47 = vmul.f32 1.442695, %v697_v19  ;;  %v622_v49 = vpop.f32.mrf.mxu2 }
 0x120   : > { %v1865_v24 = vpop.eup %1864  ;;  %v1514_v28 = vpack.c.bf16 %v1014_v32, %v1013_v10  ;;  %v887_v35 = vadd.f32 1.0, %v1863_v39  ;;  %1876 = vpow2.f32 %v821_v30  ;;  %v662_v53 = vpop.f32.mrf.mxu3  ;;  %v2351_v57 = vadd.f32 %v2325_v62, %v622_v49 }
 0x121   : > { %v1867_v20 = vpop.eup %1866  ;;  %1610 = vst [vmem:[%s2111_s13 + $0x28] sm:$0xff] %v1474_v51   ;;  %v1554_v25 = vpack.c.bf16 %v1030_v36, %v1029_v12  ;;  %v1046_v29 = vmul.f32 %v1865_v24, %v2281_v50  ;;  %1878 = vpow2.f32 %v853_v33  ;;  %v544_v21 = vpop.f32.mrf.mxu0  ;;  %v2355_v58 = vadd.f32 %v2325_v62, %v662_v53 }
 0x122   : > { %v1869_v7 = vpop.eup %1868  ;;  %1618 = vst [vmem:[%s2111_s13 + $0x68] sm:$0xff] %v1514_v28   ;;  %1880 = vrcp.f32 %v887_v35  ;;  %v903_v37 = vadd.f32 1.0, %v1867_v20  ;;  %v2358_v27 = vadd.f32 %v2325_v62, %v544_v21  ;;  %v584_v6 = vpop.f32.mrf.mxu1  ;;  %v713_v40 = vsub.f32 0.0, %v2351_v57 }
 0x123   : > { %v1871_v59 = vpop.eup %1870  ;;  %1626 = vst [vmem:[%s2111_s13 + $0xa8] sm:$0xff] %v1554_v25   ;;  %v1594_v50 = vpack.c.bf16 %v1046_v29, %v1045_v31  ;;  %v919_v60 = vadd.f32 1.0, %v1869_v7  ;;  %1882 = vpow2.f32 %v759_v38  ;;  %v729_v3 = vsub.f32 0.0, %v2355_v58 }
 0x124   : > { %v1873_v61 = vpop.eup %1872  ;;  %1884 = vrcp.f32 %v903_v37  ;;  %v872_v63 = vadd.f32 1.0, %v1871_v59  ;;  %v2365_v4 = vadd.f32 %v2325_v62, %v584_v6  ;;  %v682_v5 = vsub.f32 0.0, %v2358_v27 }
 0x125   : > { %v1875_v1 = vpop.eup %1874  ;;  %1634 = vst [vmem:[%s2111_s13 + $0xe8] sm:$0xff] %v1594_v50   ;;  %1886 = vrcp.f32 %v919_v60  ;;  %v823_v14 = vmul.f32 1.442695, %v713_v40  ;;  %v855_v23 = vmul.f32 1.442695, %v729_v3  ;;  %v999_v33 = vmul.f32 %v1873_v61, %v2284_v2 }
 0x126   : > { %v1877_v8 = vpop.eup %1876  ;;  %1888 = vrcp.f32 %v872_v63  ;;  %v888_v52 = vadd.f32 1.0, %v1875_v1  ;;  %v698_v15 = vsub.f32 0.0, %v2365_v4  ;;  %v761_v11 = vmul.f32 1.442695, %v682_v5 }
 0x127   : > { %v1879_v9 = vpop.eup %1878  ;;  %v904_v10 = vadd.f32 1.0, %v1877_v8  ;;  %1890 = vpow2.f32 %v791_v47  ;;  %v624_v44 = vpop.f32.mrf.mxu2 }
 0x128   : > { %v1881_v18 = vpop.eup %1880  ;;  %1892 = vrcp.f32 %v888_v52  ;;  %v920_v54 = vadd.f32 1.0, %v1879_v9  ;;  %v664_v12 = vpop.f32.mrf.mxu3  ;;  %v2370_v34 = vadd.f32 %v2325_v62, %v624_v44  ;;  %v793_v30 = vmul.f32 1.442695, %v698_v15 }
 0x129   : > { %v1883_v43 = vpop.eup %1882  ;;  %1894 = vrcp.f32 %v904_v10  ;;  %v2373_v17 = vadd.f32 %v2325_v62, %v664_v12  ;;  %v1015_v24 = vmul.f32 %v1881_v18, %v2292_v55 }
 0x12a   : > { %v1885_v26 = vpop.eup %1884  ;;  %1896 = vrcp.f32 %v920_v54  ;;  %v714_v19 = vsub.f32 0.0, %v2370_v34  ;;  %v873_v53 = vadd.f32 1.0, %v1883_v43 }
 0x12b   : > { %v1887_v56 = vpop.eup %1886  ;;  %1898 = vpow2.f32 %v823_v14  ;;  %v730_v31 = vsub.f32 0.0, %v2373_v17  ;;  %v1031_v49 = vmul.f32 %v1885_v26, %v2302_v16 }
 0x12c   : > { %v1889_v45 = vpop.eup %1888  ;;  %1900 = vpow2.f32 %v855_v23  ;;  %v825_v51 = vmul.f32 1.442695, %v714_v19  ;;  %v1047_v2 = vmul.f32 %v1887_v56, %v2305_v41 }
 0x12d   : > { %v1891_v32 = vpop.eup %1890  ;;  %v1000_v39 = vmul.f32 %v1889_v45, %v2308_v42  ;;  %1902 = vpow2.f32 %v761_v11  ;;  %v857_v62 = vmul.f32 1.442695, %v730_v31 }
 0x12e   : > { %v1893_v36 = vpop.eup %1892  ;;  %1904 = vpow2.f32 %v793_v30  ;;  %v889_v29 = vadd.f32 1.0, %v1891_v32 }
 0x12f   : > { %v1895_v38 = vpop.eup %1894  ;;  %v1479_v28 = vpack.c.bf16 %v1000_v39, %v999_v33  ;;  %v1016_v35 = vmul.f32 %v1893_v36, %v2314_v48  ;;  %1906 = vpow2.f32 %v825_v51 }
 0x130   : > { %v1897_v47 = vpop.eup %1896  ;;  %v1032_v42 = vmul.f32 %v1895_v38, %v2328_v13  ;;  %1908 = vpow2.f32 %v857_v62 }
 0x131   : > { %v1899_v20 = vpop.eup %1898  ;;  %1611 = vst [vmem:[%s2111_s13 + $0x30] sm:$0xff] %v1479_v28   ;;  %v1519_v25 = vpack.c.bf16 %v1016_v35, %v1015_v24  ;;  %v1048_v55 = vmul.f32 %v1897_v47, %v2331_v0  ;;  %1910 = vrcp.f32 %v873_v53 }
 0x132   : > { %v1559_v48 = vpack.c.bf16 %v1032_v42, %v1031_v49  ;;  %v905_v21 = vadd.f32 1.0, %v1899_v20  ;;  %v1901_v7 = vpop.eup %1900  ;;  %1912 = vrcp.f32 %v889_v29 }
 0x133   : > { %1619 = vst [vmem:[%s2111_s13 + $0x70] sm:$0xff] %v1519_v25   ;;  %v1599_v16 = vpack.c.bf16 %v1048_v55, %v1047_v2  ;;  %v1903_v37 = vpop.eup %1902  ;;  %v921_v13 = vadd.f32 1.0, %v1901_v7 }
 0x134   : > { %1627 = vst [vmem:[%s2111_s13 + $0xb0] sm:$0xff] %v1559_v48   ;;  %v1905_v41 = vpop.eup %1904  ;;  %v874_v6 = vadd.f32 1.0, %v1903_v37  ;;  %1914 = vrcp.f32 %v905_v21 }
 0x135   : > { %1635 = vst [vmem:[%s2111_s13 + $0xf0] sm:$0xff] %v1599_v16   ;;  %v890_v59 = vadd.f32 1.0, %v1905_v41  ;;  %v1907_v50 = vpop.eup %1906 }
 0x136   : > { %1916 = vrcp.f32 %v874_v6  ;;  %v1909_v0 = vpop.eup %1908  ;;  %v906_v60 = vadd.f32 1.0, %v1907_v50 }
 0x137   : > { %1918 = vrcp.f32 %v890_v59  ;;  %v922_v40 = vadd.f32 1.0, %v1909_v0  ;;  %v1911_v61 = vpop.eup %1910 }
 0x138   : > { %1920 = vrcp.f32 %v921_v13  ;;  %v1913_v63 = vpop.eup %1912  ;;  %v1001_v52 = vmul.f32 %v1911_v61, %v2334_v46 }
 0x139   : > { %1922 = vrcp.f32 %v906_v60  ;;  %v1017_v10 = vmul.f32 %v1913_v63, %v2339_v22 }
 0x13a   : > { %1924 = vrcp.f32 %v922_v40  ;;  %v1915_v1 = vpop.eup %1914 }
 0x13b   : > { %v1033_v44 = vmul.f32 %v1915_v1, %v2351_v57 }
 0x13c   : > { %v1917_v3 = vpop.eup %1916 }
 0x13d   : > { %v1919_v8 = vpop.eup %1918  ;;  %v1002_v5 = vmul.f32 %v1917_v3, %v2358_v27 }
 0x13e   : > { %v1921_v9 = vpop.eup %1920  ;;  %v1018_v14 = vmul.f32 %v1919_v8, %v2365_v4 }
 0x13f   : > { %v1923_v15 = vpop.eup %1922  ;;  %v1484_v18 = vpack.c.bf16 %v1002_v5, %v1001_v52  ;;  %v1049_v23 = vmul.f32 %v1921_v9, %v2355_v58 }
 0x140   : > { %v1925_v54 = vpop.eup %1924  ;;  %v1524_v12 = vpack.c.bf16 %v1018_v14, %v1017_v10  ;;  %v1034_v43 = vmul.f32 %v1923_v15, %v2370_v34 }
 0x141   : > { %1612 = vst [vmem:[%s2111_s13 + $0x38] sm:$0xff] %v1484_v18   ;;  %v1050_v46 = vmul.f32 %v1925_v54, %v2373_v17 }
 0x142   : > { %1620 = vst [vmem:[%s2111_s13 + $0x78] sm:$0xff] %v1524_v12   ;;  %v1564_v27 = vpack.c.bf16 %v1034_v43, %v1033_v44 }
 0x143   : > { %v1604_v26 = vpack.c.bf16 %v1050_v46, %v1049_v23 }
 0x144   : > { %1628 = vst [vmem:[%s2111_s13 + $0xb8] sm:$0xff] %v1564_v27  }
 0x145   : > { %1636 = vst [vmem:[%s2111_s13 + $0xf8] sm:$0xff] %v1604_v26  }
 0x146 PF: > { %s13_s12 = sadd.s32 1, %s1933_s12  }
 0x147   : > { %p10_p4 = scmp.ge.s32.totalorder %s13_s12, 6  }
 0x149   :  { %12 = sbr.rel (!%p10_p4) target bundleno = 1 (0x1), region = 62 }

</bundles_post_ra>
